<compile_context>
chip_gen: v5e
topology: v5e:2x2
jax: 0.10.0
libtpu: 0.0.40
codegen_flags: <defaults>
</compile_context>

<pallas_src>
import functools

import jax
import jax.numpy as jnp
from jax.experimental import pallas as pl
from jax.experimental.pallas import tpu as pltpu


def _round_up(x, m):
    return ((x + m - 1) // m) * m


def _row_tile(n):
    """Row tile for streaming the row-major activations.

    - tiny inputs (<= 64 rows): one 8-aligned tile, no padding, grid=(1,)
    - larger inputs: ~n/2 rows per tile (capped at 1024) so the 'parallel'
      grid axis has >= 2 steps and can shard across v7x's two TensorCores;
      1024-row f32 tiles are a few MiB double-buffered, far under VMEM limits.
    """
    n8 = _round_up(max(n, 1), 8)
    if n8 <= 64:
        return n8
    return min(1024, _round_up(pl.cdiv(n8, 2), 8))


# ----------------------------------------------------------------------------
# Kernel 1:  y = act(x @ W + b)   (W, b resident in VMEM; row tiles streamed)
# ----------------------------------------------------------------------------
def _linear_kernel(x_ref, w_ref, b_ref, o_ref, *, apply_relu):
    y = jnp.dot(x_ref[...], w_ref[...], preferred_element_type=jnp.float32)
    y = y + b_ref[...]                      # bias add on VPU, post-GEMM (matches torch)
    if apply_relu:
        y = jnp.maximum(y, 0.0)
    o_ref[...] = y.astype(o_ref.dtype)


def linear_act(x, w, b, *, apply_relu=True):
    """ReLU(x @ w + b) (or plain affine) as a single pallas_call."""
    n, k = x.shape
    d_out = w.shape[1]
    if n == 0:
        return jnp.zeros((0, d_out), jnp.float32)

    tile = _row_tile(n)
    n_pad = _round_up(n, tile)
    xp = x if n_pad == n else jnp.pad(x, ((0, n_pad - n), (0, 0)))

    y = pl.pallas_call(
        functools.partial(_linear_kernel, apply_relu=apply_relu),
        out_shape=jax.ShapeDtypeStruct((n_pad, d_out), jnp.float32),
        grid_spec=pltpu.PrefetchScalarGridSpec(
            num_scalar_prefetch=0,
            grid=(n_pad // tile,),
            in_specs=[
                pl.BlockSpec((tile, k), lambda i: (i, 0)),     # streamed rows
                pl.BlockSpec((k, d_out), lambda i: (0, 0)),    # resident W
                pl.BlockSpec((1, d_out), lambda i: (0, 0)),    # resident b
            ],
            out_specs=pl.BlockSpec((tile, d_out), lambda i: (i, 0)),
        ),
        compiler_params=pltpu.CompilerParams(dimension_semantics=("parallel",)),
    )(xp, w, b)
    return y if n_pad == n else y[:n]


# ----------------------------------------------------------------------------
# Kernel 2: fused `out` head — sigmoid -> Linear(hid,hid)+ReLU -> Linear(hid,T)
# ----------------------------------------------------------------------------
def _out_kernel(x_ref, w1_ref, b1_ref, w2_ref, b2_ref, o_ref):
    xs = jax.nn.sigmoid(x_ref[...].astype(jnp.float32))        # torch.sigmoid(x)
    h = jnp.dot(xs, w1_ref[...], preferred_element_type=jnp.float32) + b1_ref[...]
    h = jnp.maximum(h, 0.0)                                     # SinglerLayer act
    y = jnp.dot(h, w2_ref[...], preferred_element_type=jnp.float32) + b2_ref[...]
    o_ref[...] = y.astype(o_ref.dtype)


def out_head(x, w1, b1, w2, b2):
    g, hid = x.shape
    num_tasks = w2.shape[1]
    if g == 0:
        return jnp.zeros((0, num_tasks), jnp.float32)

    tile = _row_tile(g)
    g_pad = _round_up(g, tile)
    xp = x if g_pad == g else jnp.pad(x, ((0, g_pad - g), (0, 0)))

    y = pl.pallas_call(
        _out_kernel,
        out_shape=jax.ShapeDtypeStruct((g_pad, num_tasks), jnp.float32),
        grid_spec=pltpu.PrefetchScalarGridSpec(
            num_scalar_prefetch=0,
            grid=(g_pad // tile,),
            in_specs=[
                pl.BlockSpec((tile, hid), lambda i: (i, 0)),        # streamed rows
                pl.BlockSpec((hid, hid), lambda i: (0, 0)),         # resident W1
                pl.BlockSpec((1, hid), lambda i: (0, 0)),           # resident b1
                pl.BlockSpec((hid, num_tasks), lambda i: (0, 0)),   # resident W2
                pl.BlockSpec((1, num_tasks), lambda i: (0, 0)),     # resident b2
            ],
            out_specs=pl.BlockSpec((tile, num_tasks), lambda i: (i, 0)),
        ),
        compiler_params=pltpu.CompilerParams(dimension_semantics=("parallel",)),
    )(xp, w1, b1, w2, b2)
    # Padded rows produce sigmoid(0)=0.5 garbage; they are sliced off here.
    return y if g_pad == g else y[:g]


_linear_relu_jit = jax.jit(functools.partial(linear_act, apply_relu=True))
_out_head_jit = jax.jit(out_head)


# ----------------------------------------------------------------------------
# Parameter init (mirrors initialize_weights: xavier_normal / zeros for 1-D).
# ----------------------------------------------------------------------------
def xavier_normal(key, fan_in, fan_out):
    std = (2.0 / (fan_in + fan_out)) ** 0.5
    return std * jax.random.normal(key, (fan_in, fan_out), dtype=jnp.float32)


class BaseGNNPallas:
    def __init__(self, atom_dim, bond_dim, hid_dim, num_task, key):
        k1, k2, k3, k4 = jax.random.split(key, 4)
        self.hid_dim = hid_dim
        if isinstance(num_task, int):
            self.num_tasks = num_task
            self.few_shot = False
        else:  # tuple: (num_train_tasks, num_test_tasks)
            self.num_train_tasks, self.num_test_tasks = num_task
            self.num_tasks = sum(num_task)
            self.few_shot = True
            self.test = False
        # w_atom: Linear(atom_dim, hid_dim)
        self.w_atom_w = xavier_normal(k1, atom_dim, hid_dim)
        self.w_atom_b = jnp.zeros((1, hid_dim), jnp.float32)
        # w_bond: Linear(bond_dim, hid_dim)
        self.w_bond_w = xavier_normal(k2, max(bond_dim, 1), hid_dim) if bond_dim > 0 \
            else jnp.zeros((0, hid_dim), jnp.float32)
        self.w_bond_b = jnp.zeros((1, hid_dim), jnp.float32)
        # outlayer = SinglerLayer(hid, act) -> Linear(hid, num_tasks)
        self.out_w1 = xavier_normal(k3, hid_dim, hid_dim)
        self.out_b1 = jnp.zeros((1, hid_dim), jnp.float32)
        self.out_w2 = xavier_normal(k4, hid_dim, self.num_tasks)
        self.out_b2 = jnp.zeros((1, self.num_tasks), jnp.float32)
        self.last_x = None
        # TODO(synk): node_perturb / edge_perturb / graph_perturb branches are
        # stateful None-paths of the torch module and are not modeled.

    def init_feat(self, node_x, edge_x):
        node_h = _linear_relu_jit(node_x, self.w_atom_w, self.w_atom_b)
        if edge_x.shape[1] == 0:
            # torch branch: edata['h'] = zeros(num_edges, hid); act(zeros) = zeros
            edge_h = jnp.zeros((edge_x.shape[0], self.hid_dim), jnp.float32)
        else:
            edge_h = _linear_relu_jit(edge_x, self.w_bond_w, self.w_bond_b)
        return node_h, edge_h

    def out(self, x):
        y = _out_head_jit(x, self.out_w1, self.out_b1, self.out_w2, self.out_b2)
        if self.few_shot:
            y = y[:, self.num_train_tasks:] if self.test else y[:, :self.num_train_tasks]
        self.last_x = x          # graph_perturb is None -> last_x is the raw x
        return y

    def get_last_x(self):
        return self.last_x


if __name__ == "__main__":
    key = jax.random.PRNGKey(0)
    k_model, k_node, k_edge, k_graph = jax.random.split(key, 4)

    atom_dim, bond_dim, hid_dim, num_tasks = 16, 8, 32, 4
    num_nodes, num_edges, num_graphs = 16, 24, 8

    model = BaseGNNPallas(atom_dim, bond_dim, hid_dim, num_tasks, k_model)

    node_x = jax.random.normal(k_node, (num_nodes, atom_dim), dtype=jnp.float32)
    edge_x = jax.random.normal(k_edge, (num_edges, bond_dim), dtype=jnp.float32)
    graph_x = jax.random.normal(k_graph, (num_graphs, hid_dim), dtype=jnp.float32)

    node_h, edge_h = model.init_feat(node_x, edge_x)
    out = model.out(graph_x)
    jax.block_until_ready((node_h, edge_h, out))

    # sanity check vs plain JAX reference
    ref_node = jnp.maximum(node_x @ model.w_atom_w + model.w_atom_b, 0.0)
    ref_edge = jnp.maximum(edge_x @ model.w_bond_w + model.w_bond_b, 0.0)
    s = jax.nn.sigmoid(graph_x)
    ref_out = jnp.maximum(s @ model.out_w1 + model.out_b1, 0.0) @ model.out_w2 + model.out_b2
    assert node_h.shape == (num_nodes, hid_dim)
    assert edge_h.shape == (num_edges, hid_dim)
    assert out.shape == (num_graphs, num_tasks)
    assert jnp.allclose(node_h, ref_node, atol=1e-5)
    assert jnp.allclose(edge_h, ref_edge, atol=1e-5)
    assert jnp.allclose(out, ref_out, atol=1e-5)
    assert model.get_last_x() is graph_x

    print("KERNEL_OK")
</pallas_src>

<mosaic_0001>
module attributes {stable_mosaic.version = 11 : i64} {
  func.func @_linear_kernel(%arg0: i32, %arg1: memref<16x16xf32, #tpu.memory_space<vmem>>, %arg2: memref<16x32xf32, #tpu.memory_space<vmem>>, %arg3: memref<1x32xf32, #tpu.memory_space<vmem>>, %arg4: memref<16x32xf32, #tpu.memory_space<vmem>>) attributes {dimension_semantics = [#tpu.dimension_semantics<parallel>], iteration_bounds = array<i64: 1>, scalar_prefetch = 0 : i64, scratch_operands = 0 : i64, tpu.core_type = #tpu.core_type<tc>, window_params = [{transform_indices = @transform_0, window_bounds = array<i64: 16, 16>}, {pipeline_mode = #tpu.pipeline_mode<synchronous>, transform_indices = @transform_1, window_bounds = array<i64: 16, 32>}, {pipeline_mode = #tpu.pipeline_mode<synchronous>, transform_indices = @transform_2, window_bounds = array<i64: 1, 32>}, {transform_indices = @transform_3, window_bounds = array<i64: 16, 32>}]} {
    %c0 = arith.constant 0 : index
    %c0_0 = arith.constant 0 : index
    %0 = vector.load %arg1[%c0, %c0_0] : memref<16x16xf32, #tpu.memory_space<vmem>>, vector<16x16xf32>
    %c0_1 = arith.constant 0 : index
    %c0_2 = arith.constant 0 : index
    %1 = vector.load %arg2[%c0_1, %c0_2] : memref<16x32xf32, #tpu.memory_space<vmem>>, vector<16x32xf32>
    %cst = arith.constant dense<0.000000e+00> : vector<16x32xf32>
    %2 = tpu.matmul %0, %1, %cst {dimension_numbers = #tpu.dot_dimension_numbers<[1], [0], [0], [1], [0, 0, 1, 1], [], []>} : vector<16x16xf32>, vector<16x32xf32>, vector<16x32xf32> -> vector<16x32xf32>
    %c0_3 = arith.constant 0 : index
    %c0_4 = arith.constant 0 : index
    %3 = vector.load %arg3[%c0_3, %c0_4] : memref<1x32xf32, #tpu.memory_space<vmem>>, vector<1x32xf32>
    %4 = vector.broadcast %3 : vector<1x32xf32> to vector<16x32xf32>
    %5 = arith.addf %2, %4 : vector<16x32xf32>
    %cst_5 = arith.constant 0.000000e+00 : f32
    %6 = vector.broadcast %cst_5 : f32 to vector<16x32xf32>
    %7 = arith.maximumf %5, %6 : vector<16x32xf32>
    %c0_6 = arith.constant 0 : index
    %c0_7 = arith.constant 0 : index
    %8 = vector.load %arg4[%c0_6, %c0_7] : memref<16x32xf32, #tpu.memory_space<vmem>>, vector<16x32xf32>
    tpu.vector_store %arg4[%c0_6, %c0_7], %7 {strides = array<i32>} : memref<16x32xf32, #tpu.memory_space<vmem>>, vector<16x32xf32>,
    return
  }
  func.func @transform_0(%arg0: i32) -> (i32, i32) {
    %c0_i32 = arith.constant 0 : i32
    %c0_i32_0 = arith.constant 0 : i32
    return %arg0, %c0_i32 : i32, i32
  }
  func.func @transform_1(%arg0: i32) -> (i32, i32) {
    %c0_i32 = arith.constant 0 : i32
    %c0_i32_0 = arith.constant 0 : i32
    %c0_i32_1 = arith.constant 0 : i32
    return %c0_i32, %c0_i32_0 : i32, i32
  }
  func.func @transform_2(%arg0: i32) -> (i32, i32) {
    %c0_i32 = arith.constant 0 : i32
    %c0_i32_0 = arith.constant 0 : i32
    %c0_i32_1 = arith.constant 0 : i32
    return %c0_i32, %c0_i32_0 : i32, i32
  }
  func.func @transform_3(%arg0: i32) -> (i32, i32) {
    %c0_i32 = arith.constant 0 : i32
    %c0_i32_0 = arith.constant 0 : i32
    return %arg0, %c0_i32 : i32, i32
  }
}

</mosaic_0001>

<bundles_post_ra>
// kernel: linear_act.1
= control target key start
LH: loop header
LB: loop body
LE: loop exit
PB: predicated region body
PF: predicated region fallthrough
CT: control target
= control target key end

     0   :  { %8 = vsyncpa [#allocation3], 0  ;;  %s244_s0 = inlined_call_operand.hbm [shape: f32[16,16], index: 0, kind: input, shape index: {}]   ;;  %s245_s1 = inlined_call_operand.hbm [shape: f32[16,32], index: 1, kind: input, shape index: {}]   ;;  %s246_s2 = inlined_call_operand.vmem [shape: f32[1,32], index: 2, kind: input, shape index: {}]   ;;  %s247_s3 = inlined_call_operand.hbm [shape: f32[16,32], index: 3, kind: output, shape index: {}]  }
   0x1   :  { %9 = vsyncpa [#allocation6], 0 }
   0x2   :  { %10 = vsyncpa [#allocation4], 0  ;;  %s15_s14 = sshll.u32 %s244_s0, 4  ;;  %s198_s15 = smov [#allocation2]   ;;  %s16_s14 = int_to_ptr.hbm [resolvable:$true] %s15_s14 }
   0x3   :  { %s17_s16 = sshll.u32 %s198_s15, 4  ;;  %s28_s19 = sshll.u32 %s245_s1, 4  ;;  %s18_s16 = int_to_ptr.vmem [resolvable:$true] %s17_s16  ;;  %s29_s19 = int_to_ptr.hbm [resolvable:$true] %s28_s19 }
   0x4   :  { %s199_s20 = smov 128   ;;  %s200_s21 = smov 8  }
   0x5   :  { %23 = dma.hbm_to_vmem [thread:$0]  %s16_s14, 256, %s18_s16, [#allocation3], %s199_s20, %s199_s20, %s200_s21  }
   0x6   :  { %s201_s22 = smov [#allocation5]  }
   0x7   :  { %s30_s23 = sshll.u32 %s201_s22, 4  ;;  %s31_s23 = int_to_ptr.vmem [resolvable:$true] %s30_s23 }
   0x8   :  { %36 = dma.hbm_to_vmem [thread:$0]  %s29_s19, 256, %s31_s23, [#allocation6], %s199_s20, %s199_s20, %s200_s21  }
   0x9   :  { %192 = dma.done.wait [#allocation3], 256  }
   0xa   :  { %193 = vsyncadd [#allocation3], 4294967040 }
   0xb   :  { %194 = dma.done.wait [#allocation6], 256  }
   0xc   :  { %195 = vsyncadd [#allocation6], 4294967040  ;;  %v50_v0 = vld [vmem:[#allocation5 + $0x8] sm:$0xff]  ;;  %v49_v1 = vld [vmem:[#allocation5] sm:$0xff]  ;;  %vm55_vm0 = vcmask 130048   ;;  %s202_s24 = smov [#allocation7]  }
   0xd   :  { %76 = vmatpush.msra.mxu0 %v50_v0  ;;  %112 = vmatpush.msra.mxu1 %v50_v0  ;;  %v47_v2 = vld [vmem:[#allocation2] sm:$0xff]  ;;  %v48_v3 = vld [vmem:[#allocation2 + $0x8] sm:$0xff]  ;;  %s94_s25 = sshll.u32 %s202_s24, 4  ;;  %s96_s28 = sshll.u32 %s247_s3, 4  ;;  %vm87_vm1 = vcmask 261120   ;;  %s95_s25 = int_to_ptr.vmem [resolvable:$true] %s94_s25  ;;  %s97_s28 = int_to_ptr.hbm [resolvable:$true] %s96_s28 }
   0xe   :  { %v119_v4 = vld [vmem:[%s246_s2] ss:$0 sm:$0xff] }
   0xf   :  { %77 = vmatpush.msra.mxu0 %v49_v1  ;;  %113 = vmatpush.msra.mxu1 %v49_v1 }
  0x10   :  { %110 = vmatmul.msk.f32.vlgmr.msra.gmra.mxu0 %vm55_vm0, %v47_v2  ;;  %111 = vmatmul.msk.f32.vlgmr.msra.gmra.mxu1 %vm55_vm0, %v48_v3 }
  0x8d   :  { %v79_v5 = vpop.f32.mrf.mxu0  ;;  %v82_v6 = vpop.f32.mrf.mxu1 }
  0x8e   :  { %v80_v7 = vadd.f32 %v119_v4, %v79_v5  ;;  %v83_v8 = vadd.f32 %v119_v4, %v82_v6 }
  0x90   :  { %v85_v9 = vmax.f32 %v80_v7, 0.0  ;;  %v86_v10 = vmax.f32 %v83_v8, 0.0 }
  0x92   :  { %88 = vst.msk [vmem:[#allocation7] sm:$0xff] %vm87_vm1, %v85_v9 }
  0x93   :  { %89 = vst.msk [vmem:[#allocation7 + $0x8] sm:$0xff] %vm87_vm1, %v86_v10 }
  0x94   :  { %102 = dma.vmem_to_hbm [thread:$0]  %s95_s25, 256, %s97_s28, [#allocation4], %s199_s20, %s199_s20, %s200_s21  }
  0x95   :  { %196 = dma.done.wait [#allocation4], 256  }
  0x96   :  { %197 = vsyncadd [#allocation4], 4294967040 }
  0x97   :  { %107 = vsyncpa [#allocation3], 1 }
  0x98   :  { %108 = vsyncpa [#allocation6], 1 }
  0x99   :  { %109 = vsyncpa [#allocation4], 1 }

</bundles_post_ra>
